<compile_context>
chip_gen: v7x
topology: tpu7x:2x2x1
jax: 0.10.0
libtpu: 0.0.40
codegen_flags: <defaults>
</compile_context>

<pallas_src>
import numpy as np
import jax
import jax.numpy as jnp
from jax.experimental import pallas as pl
from jax.experimental.pallas import tpu as pltpu


def _round_up(n, m):
    return ((n + m - 1) // m) * m


# ---------------------------------------------------------------------------
# Fused attention-map kernel
# ---------------------------------------------------------------------------
def _make_hist_attn_kernel(start_dim, end_dim, use_general):
    """Kernel closure with static column bounds and a static attn-type flag."""

    def kernel(x_ref, wt_ref, rep_t_ref, rep_ref, out_ref):
        x = x_ref[...]                                   # (TM, A) f32

        # Pass-through of the untouched columns: one full-width, lane-dense store.
        out_ref[...] = x

        hist = x[:, start_dim:end_dim]                   # (TM, D) static slice
        if use_general:                                  # 'general': q = hist @ W^T
            q = jnp.dot(hist, wt_ref[...],
                        preferred_element_type=jnp.float32)
        else:                                            # 'dot'
            q = hist

        # Raw scores against the shared interval memory: (TM, D) @ (D, N) -> (TM, N)
        s = jnp.dot(q, rep_t_ref[...], preferred_element_type=jnp.float32)

        # Numerically-stable softmax along the interval axis.
        m = jnp.max(s, axis=-1, keepdims=True)
        p = jnp.exp(s - m)
        p = p / jnp.sum(p, axis=-1, keepdims=True)

        # Mix the interval representations: (TM, N) @ (N, D) -> (TM, D)
        align = jnp.dot(p, rep_ref[...], preferred_element_type=jnp.float32)

        # Overwrite only the mapped hist columns.
        out_ref[:, start_dim:end_dim] = align.astype(out_ref.dtype)

    return kernel


def hist_scalar_attn_map(x, w_in, interval_rep, *, start_dim, end_dim,
                         attn_type="general", block_rows=256):
    """
    x            : [len, batch, all_emb] f32
    w_in         : [dim, dim] f32 (nn.Linear(dim, dim, bias=False).weight) -- unused for 'dot'
    interval_rep : [num_interval, emb_size] f32, emb_size == dim == end_dim - start_dim
    returns      : [len, batch, all_emb] f32
    """
    L, B, A = x.shape
    N, E = interval_rep.shape
    D = end_dim - start_dim
    assert E == D, "emb_size must equal end_dim - start_dim (== dim)"
    assert attn_type in ("general", "dot")

    M = L * B
    x2 = x.reshape(M, A).astype(jnp.float32)

    # Big row tiles; pad the row count to a multiple of the tile (>= 8 sublanes).
    TM = block_rows if M >= block_rows else _round_up(max(M, 1), 8)
    Mp = _round_up(M, TM)
    if Mp != M:
        x2 = jnp.pad(x2, ((0, Mp - M), (0, 0)))   # zero rows -> uniform softmax, sliced off

    use_general = attn_type == "general"
    w_t = (jnp.asarray(w_in, jnp.float32).T if use_general
           else jnp.eye(D, dtype=jnp.float32))            # pre-transposed for hist @ W^T
    rep = jnp.asarray(interval_rep, jnp.float32)          # (N, D)
    rep_t = rep.T                                         # (D, N) for MXU-friendly scores

    kernel = _make_hist_attn_kernel(start_dim, end_dim, use_general)

    out2 = pl.pallas_call(
        kernel,
        out_shape=jax.ShapeDtypeStruct((Mp, A), jnp.float32),
        grid_spec=pltpu.PrefetchScalarGridSpec(
            num_scalar_prefetch=0,
            grid=(Mp // TM,),
            in_specs=[
                pl.BlockSpec((TM, A), lambda i: (i, 0)),   # row tile of x
                pl.BlockSpec((D, D), lambda i: (0, 0)),    # W^T, resident
                pl.BlockSpec((D, N), lambda i: (0, 0)),    # interval_rep^T, resident
                pl.BlockSpec((N, D), lambda i: (0, 0)),    # interval_rep, resident
            ],
            out_specs=pl.BlockSpec((TM, A), lambda i: (i, 0)),
        ),
        compiler_params=pltpu.CompilerParams(
            dimension_semantics=("parallel",)),            # shards across v7x's 2 TCs
    )(x2, w_t, rep_t, rep)

    return out2[:M].reshape(L, B, A)


# ---------------------------------------------------------------------------
# Module wrapper (parameters built in-script)
# ---------------------------------------------------------------------------
class HistScalarAttnMapPallas:
    def __init__(self, start_dim, end_dim, emb_size, num_interval, dim, key,
                 attn_type="general"):
        assert attn_type in ("dot", "general", "mlp"), "Please select a valid attention type."
        # TODO(synk): 'mlp' attention branch not implemented in the Pallas kernel.
        assert attn_type != "mlp", "mlp attention not implemented in the Pallas port"
        assert end_dim - start_dim == dim and emb_size == dim
        self.start_dim = start_dim
        self.end_dim = end_dim
        self.dim = dim
        self.attn_type = attn_type

        k_rep, k_w = jax.random.split(key)
        # nn.Parameter(torch.FloatTensor(...)) is uninitialized in the original module;
        # use a standard normal init here.
        self.interval_rep = jax.random.normal(
            k_rep, (num_interval, emb_size), jnp.float32)
        if attn_type == "general":
            # nn.Linear(dim, dim, bias=False): weight ~ U(-1/sqrt(dim), 1/sqrt(dim)), shape [dim, dim]
            s = 1.0 / np.sqrt(dim)
            self.w_in = jax.random.uniform(k_w, (dim, dim), jnp.float32, -s, s)
        else:
            self.w_in = jnp.eye(dim, dtype=jnp.float32)

    def forward(self, x):
        return hist_scalar_attn_map(
            x, self.w_in, self.interval_rep,
            start_dim=self.start_dim, end_dim=self.end_dim,
            attn_type=self.attn_type)


# ---------------------------------------------------------------------------
# Pure-JAX reference (for numeric sanity check of the Pallas kernel)
# ---------------------------------------------------------------------------
def _forward_ref(mod, x):
    L, B, A = x.shape
    hist = x[:, :, mod.start_dim:mod.end_dim]          # [L, B, D]
    h_t = jnp.transpose(hist, (1, 0, 2))               # [B, L, D]
    if mod.attn_type == "general":
        h_t = h_t @ mod.w_in.T
    scores = jnp.einsum("bld,nd->bln", h_t, mod.interval_rep)
    attn = jax.nn.softmax(scores, axis=2)
    align = jnp.einsum("bln,nd->bld", attn, mod.interval_rep)
    hist_map = jnp.transpose(align, (1, 0, 2))         # [L, B, D]
    parts = []
    if mod.start_dim > 0:
        parts.append(x[:, :, :mod.start_dim])
    parts.append(hist_map)
    if A - mod.end_dim > 0:
        parts.append(x[:, :, mod.end_dim:])
    return jnp.concatenate(parts, axis=2)


# ---------------------------------------------------------------------------
if __name__ == "__main__":
    key = jax.random.PRNGKey(0)
    k_param, k_param2, k_x = jax.random.split(key, 3)

    # Small shapes consistent with the module.
    seq_len, batch = 8, 2
    all_emb = 48
    start_dim, end_dim = 8, 24
    dim = emb_size = end_dim - start_dim       # 16
    num_interval = 12

    x = jax.random.normal(k_x, (seq_len, batch, all_emb), jnp.float32)

    # attn_type = 'general' (default path)
    mod = HistScalarAttnMapPallas(start_dim, end_dim, emb_size, num_interval, dim,
                                  k_param, attn_type="general")
    out = jax.block_until_ready(mod.forward(x))
    assert out.shape == (seq_len, batch, all_emb), out.shape
    ref = jax.block_until_ready(_forward_ref(mod, x))
    np.testing.assert_allclose(np.asarray(out), np.asarray(ref), rtol=2e-3, atol=2e-3)

    # attn_type = 'dot' (no input projection)
    mod_dot = HistScalarAttnMapPallas(start_dim, end_dim, emb_size, num_interval, dim,
                                      k_param2, attn_type="dot")
    out_dot = jax.block_until_ready(mod_dot.forward(x))
    ref_dot = jax.block_until_ready(_forward_ref(mod_dot, x))
    np.testing.assert_allclose(np.asarray(out_dot), np.asarray(ref_dot),
                               rtol=2e-3, atol=2e-3)

    print("KERNEL_OK")
</pallas_src>

<mosaic_0001>
module attributes {stable_mosaic.version = 11 : i64} {
  func.func @kernel(%arg0: i32, %arg1: memref<16x48xf32, #tpu.memory_space<vmem>>, %arg2: memref<16x16xf32, #tpu.memory_space<vmem>>, %arg3: memref<16x12xf32, #tpu.memory_space<vmem>>, %arg4: memref<12x16xf32, #tpu.memory_space<vmem>>, %arg5: memref<16x48xf32, #tpu.memory_space<vmem>>) attributes {dimension_semantics = [#tpu.dimension_semantics<parallel>], iteration_bounds = array<i64: 1>, scalar_prefetch = 0 : i64, scratch_operands = 0 : i64, tpu.core_type = #tpu.core_type<tc>, window_params = [{transform_indices = @transform_0, window_bounds = array<i64: 16, 48>}, {pipeline_mode = #tpu.pipeline_mode<synchronous>, transform_indices = @transform_1, window_bounds = array<i64: 16, 16>}, {pipeline_mode = #tpu.pipeline_mode<synchronous>, transform_indices = @transform_2, window_bounds = array<i64: 16, 12>}, {pipeline_mode = #tpu.pipeline_mode<synchronous>, transform_indices = @transform_3, window_bounds = array<i64: 12, 16>}, {transform_indices = @transform_4, window_bounds = array<i64: 16, 48>}]} {
    %c0 = arith.constant 0 : index
    %c0_0 = arith.constant 0 : index
    %0 = vector.load %arg1[%c0, %c0_0] : memref<16x48xf32, #tpu.memory_space<vmem>>, vector<16x48xf32>
    %c0_1 = arith.constant 0 : index
    %c0_2 = arith.constant 0 : index
    %1 = vector.load %arg5[%c0_1, %c0_2] : memref<16x48xf32, #tpu.memory_space<vmem>>, vector<16x48xf32>
    tpu.vector_store %arg5[%c0_1, %c0_2], %0 {strides = array<i32>} : memref<16x48xf32, #tpu.memory_space<vmem>>, vector<16x48xf32>,
    %2 = vector.extract_strided_slice %0 {offsets = [0, 8], sizes = [16, 16], strides = [1, 1]} : vector<16x48xf32> to vector<16x16xf32>
    %c0_3 = arith.constant 0 : index
    %c0_4 = arith.constant 0 : index
    %3 = vector.load %arg2[%c0_3, %c0_4] : memref<16x16xf32, #tpu.memory_space<vmem>>, vector<16x16xf32>
    %cst = arith.constant dense<0.000000e+00> : vector<16x16xf32>
    %4 = tpu.matmul %2, %3, %cst {dimension_numbers = #tpu.dot_dimension_numbers<[1], [0], [0], [1], [0, 0, 1, 1], [], []>} : vector<16x16xf32>, vector<16x16xf32>, vector<16x16xf32> -> vector<16x16xf32>
    %c0_5 = arith.constant 0 : index
    %c0_6 = arith.constant 0 : index
    %5 = vector.load %arg3[%c0_5, %c0_6] : memref<16x12xf32, #tpu.memory_space<vmem>>, vector<16x12xf32>
    %cst_7 = arith.constant dense<0.000000e+00> : vector<16x12xf32>
    %6 = tpu.matmul %4, %5, %cst_7 {dimension_numbers = #tpu.dot_dimension_numbers<[1], [0], [0], [1], [0, 0, 1, 1], [], []>} : vector<16x16xf32>, vector<16x12xf32>, vector<16x12xf32> -> vector<16x12xf32>
    %cst_8 = arith.constant dense<0xFF800000> : vector<16xf32>
    %7 = vector.multi_reduction <maximumf>, %6, %cst_8 [1] : vector<16x12xf32> to vector<16xf32>
    %8 = vector.shape_cast %7 : vector<16xf32> to vector<16x1xf32>
    %9 = vector.broadcast %8 : vector<16x1xf32> to vector<16x12xf32>
    %10 = arith.subf %6, %9 : vector<16x12xf32>
    %11 = math.exp %10 : vector<16x12xf32>
    %cst_9 = arith.constant dense<0.000000e+00> : vector<16xf32>
    %12 = vector.multi_reduction <add>, %11, %cst_9 [1] : vector<16x12xf32> to vector<16xf32>
    %13 = vector.shape_cast %12 : vector<16xf32> to vector<16x1xf32>
    %14 = vector.broadcast %13 : vector<16x1xf32> to vector<16x12xf32>
    %15 = arith.divf %11, %14 : vector<16x12xf32>
    %c0_10 = arith.constant 0 : index
    %c0_11 = arith.constant 0 : index
    %16 = vector.load %arg4[%c0_10, %c0_11] : memref<12x16xf32, #tpu.memory_space<vmem>>, vector<12x16xf32>
    %cst_12 = arith.constant dense<0.000000e+00> : vector<16x16xf32>
    %17 = tpu.matmul %15, %16, %cst_12 {dimension_numbers = #tpu.dot_dimension_numbers<[1], [0], [0], [1], [0, 0, 1, 1], [], []>} : vector<16x12xf32>, vector<12x16xf32>, vector<16x16xf32> -> vector<16x16xf32>
    %c0_13 = arith.constant 0 : index
    %c8 = arith.constant 8 : index
    %18 = vector.load %arg5[%c0_13, %c8] : memref<16x48xf32, #tpu.memory_space<vmem>>, vector<16x16xf32>
    tpu.vector_store %arg5[%c0_13, %c8], %17 {strides = array<i32>} : memref<16x48xf32, #tpu.memory_space<vmem>>, vector<16x16xf32>,
    return
  }
  func.func @transform_0(%arg0: i32) -> (i32, i32) {
    %c0_i32 = arith.constant 0 : i32
    %c0_i32_0 = arith.constant 0 : i32
    return %arg0, %c0_i32 : i32, i32
  }
  func.func @transform_1(%arg0: i32) -> (i32, i32) {
    %c0_i32 = arith.constant 0 : i32
    %c0_i32_0 = arith.constant 0 : i32
    %c0_i32_1 = arith.constant 0 : i32
    return %c0_i32, %c0_i32_0 : i32, i32
  }
  func.func @transform_2(%arg0: i32) -> (i32, i32) {
    %c0_i32 = arith.constant 0 : i32
    %c0_i32_0 = arith.constant 0 : i32
    %c0_i32_1 = arith.constant 0 : i32
    return %c0_i32, %c0_i32_0 : i32, i32
  }
  func.func @transform_3(%arg0: i32) -> (i32, i32) {
    %c0_i32 = arith.constant 0 : i32
    %c0_i32_0 = arith.constant 0 : i32
    %c0_i32_1 = arith.constant 0 : i32
    return %c0_i32, %c0_i32_0 : i32, i32
  }
  func.func @transform_4(%arg0: i32) -> (i32, i32) {
    %c0_i32 = arith.constant 0 : i32
    %c0_i32_0 = arith.constant 0 : i32
    return %arg0, %c0_i32 : i32, i32
  }
}

</mosaic_0001>

<bundles_post_ra>
// kernel: tpu_custom_call.1
= control target key start
LH: loop header
LB: loop body
LE: loop exit
PB: predicated region body
PF: predicated region fallthrough
CT: control target
= control target key end

     0   :  { %9 = vsyncpa [#allocation3], 0  ;;  %s709_s0 = inlined_call_operand.hbm [shape: f32[16,48], index: 0, kind: input, shape index: {}]   ;;  %s710_s1 = inlined_call_operand.hbm [shape: f32[16,16], index: 1, kind: input, shape index: {}]   ;;  %s711_s2 = inlined_call_operand.hbm [shape: f32[16,12], index: 2, kind: input, shape index: {}]   ;;  %s712_s3 = inlined_call_operand.hbm [shape: f32[12,16], index: 3, kind: input, shape index: {}]   ;;  %s713_s4 = inlined_call_operand.hbm [shape: f32[16,48], index: 4, kind: output, shape index: {}]  }
   0x1   :  { %10 = vsyncpa [#allocation6], 0 }
   0x2   :  { %11 = vsyncpa [#allocation9], 0 }
   0x3   :  { %12 = vsyncpa [#allocation4], 0  ;;  %s578_s15 = smov [#allocation5]   ;;  %s579_s17 = smov [#allocation2]  }
   0x4   :  { %s30_s16 = sshll.u32 %s578_s15, 4  ;;  %s18_s18 = sshll.u32 %s579_s17, 4  ;;  %s31_s16 = int_to_ptr.vmem [resolvable:$true] %s30_s16  ;;  %s612_s18 = int_to_ptr.vmem [resolvable:$true] %s18_s18 }
   0x5   :  { %s460_s21 = scalar_lea.hbm %s710_s1, 256 }
   0x6   :  { %p461_p0 = scmp.ne.s32.totalorder %s710_s1, %s460_s21  ;;  %p464_p1 = scmp.lt.u32.totalorder %s460_s21, %s710_s1 }
   0x8   :  { %p466_p2 = pnand %p464_p1, %p461_p0 }
   0xa   :  { %469 = shalt.err (!%p466_p2)
}
   0xb   :  { %s470_s26 = scalar_lea.vmem %s31_s16, 256  ;;  %p475_p4 = scmp.lt.s32.totalorder %s31_s16, %s31_s16 }
   0xc   :  { %p471_p3 = scmp.ne.s32.totalorder %s31_s16, %s470_s26  ;;  %p476_p5 = scmp.lt.s32.totalorder %s470_s26, %s470_s26 }
   0xe   :  { %p477_p6 = por %p476_p5, %p475_p4 }
  0x10   :  { %p478_p7 = pnand %p477_p6, %p471_p3 }
  0x12   :  { %481 = shalt.err (!%p478_p7)
}
  0x13   :  { %s580_s27 = smov 128   ;;  %s581_s28 = smov 8  }
  0x14   :  { %36 = dma.hbm_to_vmem [thread:$0]  %s710_s1, 256, %s31_s16, [#allocation6], %s580_s27, %s580_s27, %s581_s28  }
  0x15   :  { %s482_s7 = scalar_lea.hbm %s709_s0, 256 }
  0x16   :  { %p483_p8 = scmp.ne.s32.totalorder %s709_s0, %s482_s7  ;;  %p486_p9 = scmp.lt.u32.totalorder %s482_s7, %s709_s0 }
  0x18   :  { %p488_p10 = pnand %p486_p9, %p483_p8 }
  0x1a   :  { %491 = shalt.err (!%p488_p10)
}
  0x1b   :  { %s492_s12 = scalar_lea.vmem %s612_s18, 256  ;;  %p497_p12 = scmp.lt.s32.totalorder %s612_s18, %s612_s18 }
  0x1c   :  { %p493_p11 = scmp.ne.s32.totalorder %s612_s18, %s492_s12  ;;  %p498_p13 = scmp.lt.s32.totalorder %s492_s12, %s492_s12 }
  0x1e   :  { %p499_p0 = por %p498_p13, %p497_p12 }
  0x20   :  { %p500_p1 = pnand %p499_p0, %p493_p11 }
  0x22   :  { %503 = shalt.err (!%p500_p1)
}
  0x23   :  { %24 = dma.hbm_to_vmem [thread:$0]  %s709_s0, 256, %s612_s18, [#allocation3], %s580_s27, %s580_s27, %s581_s28  }
  0x24   :  { %s582_s14 = smov [#allocation7]   ;;  %s583_s16 = smov [#allocation8]  }
  0x25   :  { %s42_s15 = sshll.u32 %s582_s14, 4  ;;  %s54_s17 = sshll.u32 %s583_s16, 4  ;;  %s43_s15 = int_to_ptr.vmem [resolvable:$true] %s42_s15  ;;  %s649_s17 = int_to_ptr.vmem [resolvable:$true] %s54_s17 }
  0x26   :  { %s504_s21 = scalar_lea.hbm %s711_s2, 256 }
  0x27   :  { %p505_p2 = scmp.ne.s32.totalorder %s711_s2, %s504_s21  ;;  %p508_p3 = scmp.lt.u32.totalorder %s504_s21, %s711_s2 }
  0x29   :  { %p510_p4 = pnand %p508_p3, %p505_p2 }
  0x2b   :  { %513 = shalt.err (!%p510_p4)
}
  0x2c   :  { %s514_s0 = scalar_lea.vmem %s43_s15, 256  ;;  %p519_p6 = scmp.lt.s32.totalorder %s43_s15, %s43_s15 }
  0x2d   :  { %p515_p5 = scmp.ne.s32.totalorder %s43_s15, %s514_s0  ;;  %p520_p7 = scmp.lt.s32.totalorder %s514_s0, %s514_s0 }
  0x2f   :  { %p521_p8 = por %p520_p7, %p519_p6 }
  0x31   :  { %p522_p9 = pnand %p521_p8, %p515_p5 }
  0x33   :  { %525 = shalt.err (!%p522_p9)
}
  0x34   :  { %48 = dma.hbm_to_vmem [thread:$0]  %s711_s2, 256, %s43_s15, [#allocation6], %s580_s27, %s580_s27, %s581_s28  }
  0x35   :  { %s526_s5 = scalar_lea.hbm %s712_s3, 256 }
  0x36   :  { %p527_p10 = scmp.ne.s32.totalorder %s712_s3, %s526_s5  ;;  %p530_p11 = scmp.lt.u32.totalorder %s526_s5, %s712_s3 }
  0x38   :  { %p532_p12 = pnand %p530_p11, %p527_p10 }
  0x3a   :  { %535 = shalt.err (!%p532_p12)
}
  0x3b   :  { %s536_s10 = scalar_lea.vmem %s649_s17, 256  ;;  %p541_p0 = scmp.lt.s32.totalorder %s649_s17, %s649_s17 }
  0x3c   :  { %p537_p13 = scmp.ne.s32.totalorder %s649_s17, %s536_s10  ;;  %p542_p1 = scmp.lt.s32.totalorder %s536_s10, %s536_s10 }
  0x3e   :  { %p543_p2 = por %p542_p1, %p541_p0 }
  0x40   :  { %p544_p3 = pnand %p543_p2, %p537_p13 }
  0x42   :  { %547 = shalt.err (!%p544_p3)
}
  0x43   :  { %60 = dma.hbm_to_vmem [thread:$0]  %s712_s3, 256, %s649_s17, [#allocation9], %s580_s27, %s580_s27, %s581_s28  }
  0x44   :  { %570 = dma.done.wait [#allocation3], 256  }
  0x45   :  { %571 = vsyncadd [#allocation3], 4294967040 }
  0x46   :  { %572 = dma.done.wait [#allocation6], 512  }
  0x47   :  { %573 = vsyncadd [#allocation6], 4294966784 }
  0x48   :  { %574 = dma.done.wait [#allocation9], 256  }
  0x49   :  { %575 = vsyncadd [#allocation9], 4294967040  ;;  %vm75_vm0 = vcmask 392192   ;;  %v73_v0 = vld [vmem:[#allocation2] sm:$0xff]  ;;  %v74_v1 = vld [vmem:[#allocation2 + $0x8] sm:$0xff]  ;;  %s584_s12 = smov 120  }
  0x4a   :  { %v78_v2 = vld [vmem:[#allocation5] sm:$0xff]  ;;  %82 = vrot.lane.b32.xlu0 %v73_v0, %s584_s12  ;;  %76 = vst.msk [vmem:[#allocation10] sm:$0xff] %vm75_vm0, %v73_v0  ;;  %77 = vst.msk [vmem:[#allocation10 + $0x8] sm:$0xff] %vm75_vm0, %v74_v1  ;;  %v79_v3 = vld [vmem:[#allocation5 + $0x8] sm:$0xff]  ;;  %vm86_vm1 = vcmask 130048   ;;  %vm249_vm2 = vcmask 97280  }
  0x4b   :  { %v166_v4 = vld [vmem:[#allocation7] sm:$0xff]  ;;  %v167_v5 = vld [vmem:[#allocation7 + $0x8] sm:$0xff]  ;;  %v429_v6 = vpack.c.bf16 %v79_v3, %v78_v2  ;;  %v272_v26 = vld [vmem:[#allocation8] sm:$0xff]  ;;  %vm280_vm3 = vcmask 1043456   ;;  %vm585_vm4 = vmmov 1   ;;  %vm367_vm6 = vcmask 195648  }
  0x4c   :  { %v433_v7 = vpack.c.bf16 %v167_v5, %v166_v4  ;;  %v273_v27 = vld [vmem:[#allocation8 + $0x8] sm:$0xf]  ;;  %vm438_vm5 = vmpackc.low %vm280_vm3, %vm585_vm4  ;;  %s586_s3 = smov [#allocation10]  }
  0x4d   :  { %430 = vmatprep.subr.bf16.mxu0 %v429_v6  ;;  %v437_v28 = vpack.c.bf16 %v273_v27, %v272_v26  ;;  %s375_s1 = sshll.u32 %s586_s3, 4  ;;  %s376_s1 = int_to_ptr.vmem [resolvable:$true] %s375_s1 }
  0x4e   :  { %434 = vmatprep.subr.bf16.mxu1 %v433_v7  ;;  %84 = vrot.lane.b32.xlu0 %v74_v1, %s584_s12  ;;  %s548_s13 = scalar_lea.vmem %s376_s1, 256  ;;  %p553_p5 = scmp.lt.s32.totalorder %s376_s1, %s376_s1 }
  0x4f   :  { %432 = vmatpush3.bf16.msra.mxu0 %v429_v6  ;;  %436 = vmatpush3.bf16.msra.mxu1 %v433_v7  ;;  %p549_p4 = scmp.ne.s32.totalorder %s376_s1, %s548_s13  ;;  %p554_p6 = scmp.lt.s32.totalorder %s548_s13, %s548_s13 }
  0x50   :  { %439 = vmatprep.subr.msk.bf16.mxu0 %vm438_vm5, %v437_v28 }
  0x51   :  { %p555_p7 = por %p554_p6, %p553_p5 }
  0x53   :  { %p556_p8 = pnand %p555_p7, %p549_p4 }
  0xbc   :  { %v83_v8 = vpop.permute.xlu0 %82 }
  0xbd   :  { %412 = vmatprep.mubr.msk.f32.mxu0 %vm86_vm1, %v83_v8 }
  0xc0   :  { %v85_v9 = vpop.permute.xlu0 %84 }
  0xc1   :  { %413 = vmatmul.mubr.msk.f32.vlgmr.msra.gmra.mrb[0].mxu0 %vm86_vm1, %v85_v9 }
  0xc2   :  { %442 = vmatpush3.bf16.msk.msra.mxu0 %vm438_vm5, %v437_v28 }
 0x194   :  { %v414_v10 = vpop.f32.mrb[0].mxu0 }
 0x195   :  { %v157_v11 = vpop.f32.mrb[1].mxu0 }
 0x196   :  { %419 = vmatprep.mubr.msk.f32.mxu1 %vm86_vm1, %v157_v11 }
 0x197   :  { %420 = vmatmul.mubr.msk.f32.vlgmr.msra.gmra.mrb[0].mxu1 %vm86_vm1, %v414_v10 }
 0x26a   :  { %v421_v12 = vpop.f32.mrb[0].mxu1 }
 0x26b   :  { %v240_v13 = vpop.f32.mrb[1].mxu1  ;;  %v253_v15 = vsel %vm249_vm2, %v421_v12, -inf }
 0x26c   :  { %v250_v14 = vsel %vm249_vm2, %v240_v13, -inf }
 0x26d   :  { %251 = vmax.xlane.f32.xlu1 %v250_v14 }
 0x271   :  { %254 = vmax.xlane.f32.xlu1 %v253_v15 }
 0x2fa   :  { %v252_v16 = vpop.xlane.xlu1 %251 }
 0x2fb   :  { %v256_v17 = vsub.f32 %v240_v13, %v252_v16 }
 0x2fd   :  { %v258_v18 = vmul.f32 1.442695, %v256_v17 }
 0x2fe   :  { %v255_v19 = vpop.xlane.xlu1 %254 }
 0x2ff   :  { %452 = vpow2.f32 %v258_v18  ;;  %v257_v20 = vsub.f32 %v421_v12, %v255_v19 }
 0x301   :  { %v260_v21 = vmul.f32 1.442695, %v257_v20 }
 0x303   :  { %454 = vpow2.f32 %v260_v21 }
 0x309   :  { %v453_v22 = vpop.eup %452 }
 0x30a   :  { %v262_v23 = vsel %vm249_vm2, %v453_v22, 0.0 }
 0x30b   :  { %263 = vadd.xlane.f32.xlu0 %v262_v23 }
 0x30d   :  { %v455_v24 = vpop.eup %454 }
 0x30e   :  { %v265_v25 = vsel %vm249_vm2, %v455_v24, 0.0 }
 0x30f   :  { %266 = vadd.xlane.f32.xlu1 %v265_v25 }
 0x398   :  { %v264_v29 = vpop.xlane.xlu0 %263 }
 0x399   :  { %456 = vrcp.f32 %v264_v29 }
 0x39c   :  { %v267_v30 = vpop.xlane.xlu1 %266 }
 0x39d   :  { %458 = vrcp.f32 %v267_v30 }
 0x3a3   :  { %v457_v31 = vpop.eup %456 }
 0x3a4   :  { %v269_v32 = vmul.f32 %v457_v31, %v453_v22 }
 0x3a6   :  { %426 = vmatprep.mubr.msk.f32.mxu0 %vm249_vm2, %v269_v32 }
 0x3a7   :  { %v459_v33 = vpop.eup %458 }
 0x3a8   :  { %v271_v34 = vmul.f32 %v459_v33, %v455_v24 }
 0x3aa   :  { %427 = vmatmul.mubr.msk.f32.vlgmr.msra.gmra.mrb[2].mxu0 %vm249_vm2, %v271_v34 }
 0x47d   :  { %v428_v35 = vpop.f32.mrb[2].mxu0 }
 0x47e   :  { %v350_v36 = vpop.f32.mrb[3].mxu0 }
 0x47f   :  { %361 = vrot.lane.b32.xlu1 %v350_v36, %s581_s28 }
 0x483   :  { %363 = vrot.lane.b32.xlu1 %v428_v35, %s581_s28 }
 0x4f1   :  { %v362_v37 = vpop.permute.xlu1 %361 }
 0x4f2   :  { %368 = vst.msk [vmem:[#allocation10] sm:$0xff] %vm367_vm6, %v362_v37 }
 0x4f5   :  { %v364_v38 = vpop.permute.xlu1 %363 }
 0x4f6   :  { %369 = vst.msk [vmem:[#allocation10 + $0x8] sm:$0xff] %vm367_vm6, %v364_v38 }
 0x4f7   :  { %559 = shalt.err (!%p556_p8)
}
 0x4f8   :  { %s560_s16 = scalar_lea.hbm %s713_s4, 256 }
 0x4f9   :  { %p561_p9 = scmp.ne.s32.totalorder %s713_s4, %s560_s16  ;;  %p564_p10 = scmp.lt.u32.totalorder %s560_s16, %s713_s4 }
 0x4fb   :  { %p566_p11 = pnand %p564_p10, %p561_p9 }
 0x4fd   :  { %569 = shalt.err (!%p566_p11)
}
 0x4fe   :  { %381 = dma.vmem_to_hbm [thread:$0]  %s376_s1, 256, %s713_s4, [#allocation4], %s580_s27, %s580_s27, %s581_s28  }
 0x4ff   :  { %576 = dma.done.wait [#allocation4], 256  }
 0x500   :  { %577 = vsyncadd [#allocation4], 4294967040 }
 0x501   :  { %385 = vsyncpa [#allocation3], 1 }
 0x502   :  { %386 = vsyncpa [#allocation6], 1 }
 0x503   :  { %387 = vsyncpa [#allocation9], 1 }
 0x504   :  { %388 = vsyncpa [#allocation4], 1 }

</bundles_post_ra>
